<compile_context>
chip_gen: v6e
topology: v6e:2x2x1
jax: 0.10.0
libtpu: 0.0.40
codegen_flags: <defaults>
</compile_context>

<pallas_src>
import functools

import jax
import jax.numpy as jnp
from jax.experimental import pallas as pl
from jax.experimental.pallas import tpu as pltpu


# ----------------------------------------------------------------------------
# Pallas kernel: fused SharedMLP (folded BN) + ReLU + max-pool over neighbors
# ----------------------------------------------------------------------------
def _branch_kernel(x_ref, *refs, n_layers, nsample, tile_p):
    """x_ref block: (1, K, Cin, TP) bf16 (Cin on sublanes, P on lanes).

    Param refs (per layer): w_t (Cout, Cin) bf16, shift (Cout, 1) f32.
    out_ref block: (1, Cout_last, TP) f32.
    slab_ref scratch: (Cin, K*TP) bf16.
    """
    slab_ref = refs[-1]
    out_ref = refs[-2]
    params = refs[:-2]
    K, TP = nsample, tile_p

    # Pack the K contiguous (Cin, TP) neighbor tiles side-by-side into one
    # (Cin, K*TP) slab: plain lane-dense copies at lane offsets s*TP, no
    # relayout (offsets are vreg-aligned whenever TP is a multiple of 128).
    for s in range(K):
        slab_ref[:, s * TP:(s + 1) * TP] = x_ref[0, s]

    # One matmul per MLP layer over all K neighbors at once (Cin is only
    # 7..39, so per-call MXU weight-push / fill-drain dominates tiny matmuls).
    h = slab_ref[...]                                          # (Cin, K*TP) bf16
    for l in range(n_layers):
        w = params[2 * l][...]                                 # (Cout_l, Cin_l) bf16
        shift = params[2 * l + 1][...]                         # (Cout_l, 1)    f32
        y = jnp.dot(w, h, preferred_element_type=jnp.float32)  # (Cout_l, K*TP)
        y = jnp.maximum(y + shift, 0.0)                        # folded bias+BN, ReLU
        # TODO(synk): torch keeps f32 between layers; bf16 here for MXU speed.
        h = y.astype(jnp.bfloat16) if l + 1 < n_layers else y

    # Max-pool over the K lane-aligned TP slices (pure VPU, no relayout).
    pooled = h[:, 0:TP]
    for s in range(1, K):
        pooled = jnp.maximum(pooled, h[:, s * TP:(s + 1) * TP])
    out_ref[0] = pooled.astype(out_ref.dtype)                  # (Cout, TP) store


def _choose_tile_p(p, b, k, cin, couts, budget_bytes=32 << 20):
    """Pick the P-tile width TP.  TP must divide P and be a multiple of 128
    (or the full P when P is small).  The VMEM estimate covers the
    double-buffered input/output blocks, the packed slab and the per-layer
    intermediates; the ~32 MiB budget fits every generation (v7x physical
    VMEM is 64 MiB).  Keeps >= 2 total grid steps when possible so the v7x
    megacore does not idle at B=1."""

    def vmem_est(tp):
        in_blk = 2 * k * cin * tp * 2                    # bf16, double-buffered
        out_blk = 2 * couts[-1] * tp * 4                 # f32,  double-buffered
        slab = cin * k * tp * 2                          # bf16 scratch slab
        inter = sum(couts) * k * tp * 4 + sum(couts[:-1]) * k * tp * 2
        return in_blk + out_blk + slab + inter

    if p % 128 != 0:
        return p, vmem_est(p)                            # tiny P: one full tile
    cands = sorted((tp for tp in range(128, p + 1, 128) if p % tp == 0),
                   reverse=True)
    best = 128
    for tp in cands:
        if b * (p // tp) < 2 and tp > 128:
            continue                                     # megacore: >=2 steps
        if vmem_est(tp) <= budget_bytes:
            best = tp
            break
    return best, vmem_est(best)


def branch_mlp_maxpool(grouped, layer_params):
    """grouped: (B, K, Cin, P) bf16; layer_params: [(w_t (Cout,Cin) bf16,
    shift (Cout,1) f32), ...].  Returns (B, Cout_last, P) f32."""
    B, K, Cin, P = grouped.shape
    n_layers = len(layer_params)
    couts = [w.shape[0] for (w, _) in layer_params]
    Cout = couts[-1]
    TP, vmem_bytes = _choose_tile_p(P, B, K, Cin, couts)
    n_tiles = P // TP

    in_specs = [pl.BlockSpec((1, K, Cin, TP), lambda b, j: (b, 0, 0, j))]
    flat_params = []
    for (w_t, shift) in layer_params:
        flat_params.append(w_t)
        in_specs.append(pl.BlockSpec(w_t.shape, lambda b, j: (0, 0)))
        flat_params.append(shift)
        in_specs.append(pl.BlockSpec(shift.shape, lambda b, j: (0, 0)))

    # Explicit scoped-VMEM request sized to the chosen tile (with headroom),
    # capped at 48 MiB so it stays under v7x's 64 MiB physical VMEM.
    vmem_limit = int(min(48 << 20, max(32 << 20, 2 * vmem_bytes)))

    kernel = functools.partial(_branch_kernel, n_layers=n_layers,
                               nsample=K, tile_p=TP)
    return pl.pallas_call(
        kernel,
        out_shape=jax.ShapeDtypeStruct((B, Cout, P), jnp.float32),
        grid=(B, n_tiles),
        in_specs=in_specs,
        out_specs=pl.BlockSpec((1, Cout, TP), lambda b, j: (b, 0, j)),
        scratch_shapes=[pltpu.VMEM((Cin, K * TP), jnp.bfloat16)],
        compiler_params=pltpu.CompilerParams(
            dimension_semantics=("parallel", "parallel"),
            vmem_limit_bytes=vmem_limit),
    )(grouped, *flat_params)


# ----------------------------------------------------------------------------
# Plain-JAX glue: FPS, ball query, grouping (data-dependent gathers)
# ----------------------------------------------------------------------------
def farthest_point_sampling(xyz, npoint):
    """xyz: (B, N, 3) -> indices (B, npoint) int32. Starts at index 0."""
    B, N, _ = xyz.shape

    def body(i, state):
        idx, dist, farthest = state
        idx = idx.at[:, i].set(farthest)
        centroid = jnp.take_along_axis(xyz, farthest[:, None, None], axis=1)  # (B,1,3)
        d = jnp.sum((xyz - centroid) ** 2, axis=-1)                            # (B,N)
        dist = jnp.minimum(dist, d)
        farthest = jnp.argmax(dist, axis=-1).astype(jnp.int32)
        return idx, dist, farthest

    idx0 = jnp.zeros((B, npoint), jnp.int32)
    dist0 = jnp.full((B, N), 1e10, jnp.float32)
    far0 = jnp.zeros((B,), jnp.int32)
    idx, _, _ = jax.lax.fori_loop(0, npoint, body, (idx0, dist0, far0))
    return idx


def ball_query(radius, nsample, xyz, new_xyz):
    """xyz: (B,N,3), new_xyz: (B,P,3) -> (B,P,nsample) neighbor indices.
    First nsample in-radius indices (ascending), remaining slots filled with
    the first found index (index 0 if none found)."""
    N = xyz.shape[1]
    sqrdists = jnp.sum((new_xyz[:, :, None, :] - xyz[:, None, :, :]) ** 2, -1)
    within = sqrdists <= radius * radius
    keyed = jnp.where(within, jnp.arange(N, dtype=jnp.int32)[None, None, :], N)
    if nsample < N:
        # partial sort: nsample smallest keys in ascending order
        neg_topk, _ = jax.lax.top_k(-keyed, nsample)
        sorted_idx = -neg_topk
    else:
        sorted_idx = jnp.sort(keyed, axis=-1)[..., :nsample]
    first = sorted_idx[..., :1]
    idx = jnp.where(sorted_idx == N, first, sorted_idx)
    idx = jnp.where(idx == N, 0, idx)
    return idx


def pointnet_sa_msg_forward(xyz, features, params_per_branch,
                            npoint, radius_list, sample_list):
    """xyz: (B, N, 3); features: (B, C, N) (torch layout).
    Returns (new_xyz (B, npoint, 3), msg_features (B, sum(Cout), npoint, 1))."""
    fps_idx = farthest_point_sampling(xyz, npoint)                   # (B, P)
    new_xyz = jnp.take_along_axis(xyz, fps_idx[..., None], axis=1)   # (B, P, 3)

    # bf16 BEFORE the gathers: the grouped tensor XLA materializes in HBM is
    # bf16-native (no separate f32 gather + astype pass).
    xyz_t = jnp.transpose(xyz, (0, 2, 1)).astype(jnp.bfloat16)          # (B, 3, N)
    new_xyz_t = jnp.transpose(new_xyz, (0, 2, 1)).astype(jnp.bfloat16)  # (B, 3, P)
    feat_b = features.astype(jnp.bfloat16)                              # (B, C, N)

    outs = []
    for i, (radius, nsample) in enumerate(zip(radius_list, sample_list)):
        idx = ball_query(radius, nsample, xyz, new_xyz)              # (B, P, K)
        idx_b = jnp.transpose(idx, (0, 2, 1))[:, :, None, :]         # (B, K, 1, P)

        # Gather straight into (B, K, Cin, P): Cin on sublanes, P on lanes.
        g_xyz = jnp.take_along_axis(xyz_t[:, None, :, :], idx_b, axis=3)    # (B,K,3,P)
        g_xyz = g_xyz - new_xyz_t[:, None, :, :]
        g_feat = jnp.take_along_axis(feat_b[:, None, :, :], idx_b, axis=3)  # (B,K,C,P)
        grouped = jnp.concatenate([g_xyz, g_feat], axis=2)           # use_xyz

        pooled = branch_mlp_maxpool(grouped, params_per_branch[i])   # (B,Cout,P) f32
        outs.append(pooled[..., None])                               # NCHW (B,Cout,P,1)
    return new_xyz, jnp.concatenate(outs, axis=1)


# ----------------------------------------------------------------------------
# Deterministic parameter construction (synthetic; bias + BN folded offline)
# ----------------------------------------------------------------------------
def init_shared_mlp_params(key, mlp_spec):
    """SharedMLP quirk: builds len(spec)-1 convs but forward applies only the
    first len(spec)-2 of them — we only build the applied layers.
    Conv bias + eval-mode BN are folded into (w_t, shift)."""
    params = []
    n_applied = len(mlp_spec) - 2
    eps = 1e-5
    for i in range(n_applied):
        cin, cout = mlp_spec[i], mlp_spec[i + 1]
        key, k1, k2, k3, k4, k5, k6 = jax.random.split(key, 7)
        w = jax.random.normal(k1, (cin, cout), jnp.float32) / jnp.sqrt(cin)
        b = 0.1 * jax.random.normal(k2, (1, cout), jnp.float32)
        gamma = 1.0 + 0.1 * jax.random.normal(k3, (1, cout), jnp.float32)
        beta = 0.1 * jax.random.normal(k4, (1, cout), jnp.float32)
        rmean = 0.1 * jax.random.normal(k5, (1, cout), jnp.float32)
        rvar = 1.0 + 0.1 * jax.random.uniform(k6, (1, cout), jnp.float32)
        scale = gamma / jnp.sqrt(rvar + eps)           # (1, cout)
        shift_bn = beta - rmean * scale                # (1, cout)
        # y = (x @ w + b) * scale + shift_bn  ==  x @ (w*scale) + (b*scale+shift_bn)
        w_t = jnp.transpose(w * scale).astype(jnp.bfloat16)   # (cout, cin)
        shift = jnp.transpose(b * scale + shift_bn)           # (cout, 1) f32
        params.append((w_t, shift))
    return params


if __name__ == "__main__":
    key = jax.random.PRNGKey(0)
    B, N, C = 2, 16, 4          # batch, num points, feature channels
    npoint = 8
    radius_list = [0.4, 0.8]
    sample_list = [8, 16]
    mlp_list = [[C, 16, 32, 64], [C, 16, 32, 64]]
    use_xyz = True

    k_xyz, k_feat, k_params = jax.random.split(key, 3)
    xyz = jax.random.uniform(k_xyz, (B, N, 3), jnp.float32)        # "input"
    features = jax.random.normal(k_feat, (B, C, N), jnp.float32)   # "features"

    params_per_branch = []
    for i in range(len(radius_list)):
        spec = list(mlp_list[i])
        if use_xyz:
            spec[0] += 3
        k_params, sub = jax.random.split(k_params)
        params_per_branch.append(init_shared_mlp_params(sub, spec))

    new_xyz, msg_features = pointnet_sa_msg_forward(
        xyz, features, params_per_branch, npoint, radius_list, sample_list)
    jax.block_until_ready((new_xyz, msg_features))

    assert new_xyz.shape == (B, npoint, 3)
    # each branch applies layers -> 16 -> 32 (last 64-conv skipped), so 32+32
    assert msg_features.shape == (B, 64, npoint, 1)
    print("KERNEL_OK")
</pallas_src>

<mosaic_0001>
module attributes {stable_mosaic.version = 11 : i64} {
  func.func @_branch_kernel(%arg0: i32, %arg1: i32, %arg2: memref<1x8x7x8xbf16, #tpu.memory_space<vmem>>, %arg3: memref<16x7xbf16, #tpu.memory_space<vmem>>, %arg4: memref<16x1xf32, #tpu.memory_space<vmem>>, %arg5: memref<32x16xbf16, #tpu.memory_space<vmem>>, %arg6: memref<32x1xf32, #tpu.memory_space<vmem>>, %arg7: memref<1x32x8xf32, #tpu.memory_space<vmem>>, %arg8: memref<7x64xbf16, #tpu.memory_space<vmem>>) attributes {dimension_semantics = [#tpu.dimension_semantics<parallel>, #tpu.dimension_semantics<parallel>], iteration_bounds = array<i64: 2, 1>, scalar_prefetch = 0 : i64, scratch_operands = 1 : i64, tpu.core_type = #tpu.core_type<tc>, window_params = [{transform_indices = @transform_0, window_bounds = array<i64: 1, 8, 7, 8>}, {pipeline_mode = #tpu.pipeline_mode<synchronous>, transform_indices = @transform_1, window_bounds = array<i64: 16, 7>}, {pipeline_mode = #tpu.pipeline_mode<synchronous>, transform_indices = @transform_2, window_bounds = array<i64: 16, 1>}, {pipeline_mode = #tpu.pipeline_mode<synchronous>, transform_indices = @transform_3, window_bounds = array<i64: 32, 16>}, {pipeline_mode = #tpu.pipeline_mode<synchronous>, transform_indices = @transform_4, window_bounds = array<i64: 32, 1>}, {transform_indices = @transform_5, window_bounds = array<i64: 1, 32, 8>}]} {
    %c0 = arith.constant 0 : index
    %c0_0 = arith.constant 0 : index
    %c0_1 = arith.constant 0 : index
    %c0_2 = arith.constant 0 : index
    %0 = vector.load %arg2[%c0, %c0_0, %c0_1, %c0_2] : memref<1x8x7x8xbf16, #tpu.memory_space<vmem>>, vector<1x1x7x8xbf16>
    %1 = vector.shape_cast %0 : vector<1x1x7x8xbf16> to vector<7x8xbf16>
    %c0_3 = arith.constant 0 : index
    %c0_4 = arith.constant 0 : index
    %2 = vector.load %arg8[%c0_3, %c0_4] : memref<7x64xbf16, #tpu.memory_space<vmem>>, vector<7x8xbf16>
    tpu.vector_store %arg8[%c0_3, %c0_4], %1 {strides = array<i32>} : memref<7x64xbf16, #tpu.memory_space<vmem>>, vector<7x8xbf16>,
    %c0_5 = arith.constant 0 : index
    %c1 = arith.constant 1 : index
    %c0_6 = arith.constant 0 : index
    %c0_7 = arith.constant 0 : index
    %3 = vector.load %arg2[%c0_5, %c1, %c0_6, %c0_7] : memref<1x8x7x8xbf16, #tpu.memory_space<vmem>>, vector<1x1x7x8xbf16>
    %4 = vector.shape_cast %3 : vector<1x1x7x8xbf16> to vector<7x8xbf16>
    %c0_8 = arith.constant 0 : index
    %c8 = arith.constant 8 : index
    %5 = vector.load %arg8[%c0_8, %c8] : memref<7x64xbf16, #tpu.memory_space<vmem>>, vector<7x8xbf16>
    tpu.vector_store %arg8[%c0_8, %c8], %4 {strides = array<i32>} : memref<7x64xbf16, #tpu.memory_space<vmem>>, vector<7x8xbf16>,
    %c0_9 = arith.constant 0 : index
    %c2 = arith.constant 2 : index
    %c0_10 = arith.constant 0 : index
    %c0_11 = arith.constant 0 : index
    %6 = vector.load %arg2[%c0_9, %c2, %c0_10, %c0_11] : memref<1x8x7x8xbf16, #tpu.memory_space<vmem>>, vector<1x1x7x8xbf16>
    %7 = vector.shape_cast %6 : vector<1x1x7x8xbf16> to vector<7x8xbf16>
    %c0_12 = arith.constant 0 : index
    %c16 = arith.constant 16 : index
    %8 = vector.load %arg8[%c0_12, %c16] : memref<7x64xbf16, #tpu.memory_space<vmem>>, vector<7x8xbf16>
    tpu.vector_store %arg8[%c0_12, %c16], %7 {strides = array<i32>} : memref<7x64xbf16, #tpu.memory_space<vmem>>, vector<7x8xbf16>,
    %c0_13 = arith.constant 0 : index
    %c3 = arith.constant 3 : index
    %c0_14 = arith.constant 0 : index
    %c0_15 = arith.constant 0 : index
    %9 = vector.load %arg2[%c0_13, %c3, %c0_14, %c0_15] : memref<1x8x7x8xbf16, #tpu.memory_space<vmem>>, vector<1x1x7x8xbf16>
    %10 = vector.shape_cast %9 : vector<1x1x7x8xbf16> to vector<7x8xbf16>
    %c0_16 = arith.constant 0 : index
    %c24 = arith.constant 24 : index
    %11 = vector.load %arg8[%c0_16, %c24] : memref<7x64xbf16, #tpu.memory_space<vmem>>, vector<7x8xbf16>
    tpu.vector_store %arg8[%c0_16, %c24], %10 {strides = array<i32>} : memref<7x64xbf16, #tpu.memory_space<vmem>>, vector<7x8xbf16>,
    %c0_17 = arith.constant 0 : index
    %c4 = arith.constant 4 : index
    %c0_18 = arith.constant 0 : index
    %c0_19 = arith.constant 0 : index
    %12 = vector.load %arg2[%c0_17, %c4, %c0_18, %c0_19] : memref<1x8x7x8xbf16, #tpu.memory_space<vmem>>, vector<1x1x7x8xbf16>
    %13 = vector.shape_cast %12 : vector<1x1x7x8xbf16> to vector<7x8xbf16>
    %c0_20 = arith.constant 0 : index
    %c32 = arith.constant 32 : index
    %14 = vector.load %arg8[%c0_20, %c32] : memref<7x64xbf16, #tpu.memory_space<vmem>>, vector<7x8xbf16>
    tpu.vector_store %arg8[%c0_20, %c32], %13 {strides = array<i32>} : memref<7x64xbf16, #tpu.memory_space<vmem>>, vector<7x8xbf16>,
    %c0_21 = arith.constant 0 : index
    %c5 = arith.constant 5 : index
    %c0_22 = arith.constant 0 : index
    %c0_23 = arith.constant 0 : index
    %15 = vector.load %arg2[%c0_21, %c5, %c0_22, %c0_23] : memref<1x8x7x8xbf16, #tpu.memory_space<vmem>>, vector<1x1x7x8xbf16>
    %16 = vector.shape_cast %15 : vector<1x1x7x8xbf16> to vector<7x8xbf16>
    %c0_24 = arith.constant 0 : index
    %c40 = arith.constant 40 : index
    %17 = vector.load %arg8[%c0_24, %c40] : memref<7x64xbf16, #tpu.memory_space<vmem>>, vector<7x8xbf16>
    tpu.vector_store %arg8[%c0_24, %c40], %16 {strides = array<i32>} : memref<7x64xbf16, #tpu.memory_space<vmem>>, vector<7x8xbf16>,
    %c0_25 = arith.constant 0 : index
    %c6 = arith.constant 6 : index
    %c0_26 = arith.constant 0 : index
    %c0_27 = arith.constant 0 : index
    %18 = vector.load %arg2[%c0_25, %c6, %c0_26, %c0_27] : memref<1x8x7x8xbf16, #tpu.memory_space<vmem>>, vector<1x1x7x8xbf16>
    %19 = vector.shape_cast %18 : vector<1x1x7x8xbf16> to vector<7x8xbf16>
    %c0_28 = arith.constant 0 : index
    %c48 = arith.constant 48 : index
    %20 = vector.load %arg8[%c0_28, %c48] : memref<7x64xbf16, #tpu.memory_space<vmem>>, vector<7x8xbf16>
    tpu.vector_store %arg8[%c0_28, %c48], %19 {strides = array<i32>} : memref<7x64xbf16, #tpu.memory_space<vmem>>, vector<7x8xbf16>,
    %c0_29 = arith.constant 0 : index
    %c7 = arith.constant 7 : index
    %c0_30 = arith.constant 0 : index
    %c0_31 = arith.constant 0 : index
    %21 = vector.load %arg2[%c0_29, %c7, %c0_30, %c0_31] : memref<1x8x7x8xbf16, #tpu.memory_space<vmem>>, vector<1x1x7x8xbf16>
    %22 = vector.shape_cast %21 : vector<1x1x7x8xbf16> to vector<7x8xbf16>
    %c0_32 = arith.constant 0 : index
    %c56 = arith.constant 56 : index
    %23 = vector.load %arg8[%c0_32, %c56] : memref<7x64xbf16, #tpu.memory_space<vmem>>, vector<7x8xbf16>
    tpu.vector_store %arg8[%c0_32, %c56], %22 {strides = array<i32>} : memref<7x64xbf16, #tpu.memory_space<vmem>>, vector<7x8xbf16>,
    %c0_33 = arith.constant 0 : index
    %c0_34 = arith.constant 0 : index
    %24 = vector.load %arg8[%c0_33, %c0_34] : memref<7x64xbf16, #tpu.memory_space<vmem>>, vector<7x64xbf16>
    %c0_35 = arith.constant 0 : index
    %c0_36 = arith.constant 0 : index
    %25 = vector.load %arg3[%c0_35, %c0_36] : memref<16x7xbf16, #tpu.memory_space<vmem>>, vector<16x7xbf16>
    %c0_37 = arith.constant 0 : index
    %c0_38 = arith.constant 0 : index
    %26 = vector.load %arg4[%c0_37, %c0_38] : memref<16x1xf32, #tpu.memory_space<vmem>>, vector<16x1xf32>
    %cst = arith.constant dense<0.000000e+00> : vector<16x64xf32>
    %27 = tpu.matmul %25, %24, %cst {dimension_numbers = #tpu.dot_dimension_numbers<[1], [0], [0], [1], [0, 0, 1, 1], [], []>} : vector<16x7xbf16>, vector<7x64xbf16>, vector<16x64xf32> -> vector<16x64xf32>
    %28 = vector.broadcast %26 : vector<16x1xf32> to vector<16x64xf32>
    %29 = arith.addf %27, %28 : vector<16x64xf32>
    %cst_39 = arith.constant 0.000000e+00 : f32
    %30 = vector.broadcast %cst_39 : f32 to vector<16x64xf32>
    %31 = arith.maximumf %29, %30 : vector<16x64xf32>
    %32 = arith.truncf %31 : vector<16x64xf32> to vector<16x64xbf16>
    %c0_40 = arith.constant 0 : index
    %c0_41 = arith.constant 0 : index
    %33 = vector.load %arg5[%c0_40, %c0_41] : memref<32x16xbf16, #tpu.memory_space<vmem>>, vector<32x16xbf16>
    %c0_42 = arith.constant 0 : index
    %c0_43 = arith.constant 0 : index
    %34 = vector.load %arg6[%c0_42, %c0_43] : memref<32x1xf32, #tpu.memory_space<vmem>>, vector<32x1xf32>
    %cst_44 = arith.constant dense<0.000000e+00> : vector<32x64xf32>
    %35 = tpu.matmul %33, %32, %cst_44 {dimension_numbers = #tpu.dot_dimension_numbers<[1], [0], [0], [1], [0, 0, 1, 1], [], []>} : vector<32x16xbf16>, vector<16x64xbf16>, vector<32x64xf32> -> vector<32x64xf32>
    %36 = vector.broadcast %34 : vector<32x1xf32> to vector<32x64xf32>
    %37 = arith.addf %35, %36 : vector<32x64xf32>
    %cst_45 = arith.constant 0.000000e+00 : f32
    %38 = vector.broadcast %cst_45 : f32 to vector<32x64xf32>
    %39 = arith.maximumf %37, %38 : vector<32x64xf32>
    %40 = vector.extract_strided_slice %39 {offsets = [0, 0], sizes = [32, 8], strides = [1, 1]} : vector<32x64xf32> to vector<32x8xf32>
    %41 = vector.extract_strided_slice %39 {offsets = [0, 8], sizes = [32, 8], strides = [1, 1]} : vector<32x64xf32> to vector<32x8xf32>
    %42 = arith.maximumf %40, %41 : vector<32x8xf32>
    %43 = vector.extract_strided_slice %39 {offsets = [0, 16], sizes = [32, 8], strides = [1, 1]} : vector<32x64xf32> to vector<32x8xf32>
    %44 = arith.maximumf %42, %43 : vector<32x8xf32>
    %45 = vector.extract_strided_slice %39 {offsets = [0, 24], sizes = [32, 8], strides = [1, 1]} : vector<32x64xf32> to vector<32x8xf32>
    %46 = arith.maximumf %44, %45 : vector<32x8xf32>
    %47 = vector.extract_strided_slice %39 {offsets = [0, 32], sizes = [32, 8], strides = [1, 1]} : vector<32x64xf32> to vector<32x8xf32>
    %48 = arith.maximumf %46, %47 : vector<32x8xf32>
    %49 = vector.extract_strided_slice %39 {offsets = [0, 40], sizes = [32, 8], strides = [1, 1]} : vector<32x64xf32> to vector<32x8xf32>
    %50 = arith.maximumf %48, %49 : vector<32x8xf32>
    %51 = vector.extract_strided_slice %39 {offsets = [0, 48], sizes = [32, 8], strides = [1, 1]} : vector<32x64xf32> to vector<32x8xf32>
    %52 = arith.maximumf %50, %51 : vector<32x8xf32>
    %53 = vector.extract_strided_slice %39 {offsets = [0, 56], sizes = [32, 8], strides = [1, 1]} : vector<32x64xf32> to vector<32x8xf32>
    %54 = arith.maximumf %52, %53 : vector<32x8xf32>
    %c0_46 = arith.constant 0 : index
    %c0_47 = arith.constant 0 : index
    %c0_48 = arith.constant 0 : index
    %55 = vector.load %arg7[%c0_46, %c0_47, %c0_48] : memref<1x32x8xf32, #tpu.memory_space<vmem>>, vector<1x32x8xf32>
    %56 = vector.shape_cast %55 : vector<1x32x8xf32> to vector<32x8xf32>
    %57 = vector.shape_cast %54 : vector<32x8xf32> to vector<1x32x8xf32>
    tpu.vector_store %arg7[%c0_46, %c0_47, %c0_48], %57 {strides = array<i32>} : memref<1x32x8xf32, #tpu.memory_space<vmem>>, vector<1x32x8xf32>,
    return
  }
  func.func @transform_0(%arg0: i32, %arg1: i32) -> (i32, i32, i32, i32) {
    %c0_i32 = arith.constant 0 : i32
    %c0_i32_0 = arith.constant 0 : i32
    %c0_i32_1 = arith.constant 0 : i32
    return %arg0, %c0_i32, %c0_i32_0, %arg1 : i32, i32, i32, i32
  }
  func.func @transform_1(%arg0: i32, %arg1: i32) -> (i32, i32) {
    %c0_i32 = arith.constant 0 : i32
    %c0_i32_0 = arith.constant 0 : i32
    %c0_i32_1 = arith.constant 0 : i32
    return %c0_i32, %c0_i32_0 : i32, i32
  }
  func.func @transform_2(%arg0: i32, %arg1: i32) -> (i32, i32) {
    %c0_i32 = arith.constant 0 : i32
    %c0_i32_0 = arith.constant 0 : i32
    %c0_i32_1 = arith.constant 0 : i32
    return %c0_i32, %c0_i32_0 : i32, i32
  }
  func.func @transform_3(%arg0: i32, %arg1: i32) -> (i32, i32) {
    %c0_i32 = arith.constant 0 : i32
    %c0_i32_0 = arith.constant 0 : i32
    %c0_i32_1 = arith.constant 0 : i32
    return %c0_i32, %c0_i32_0 : i32, i32
  }
  func.func @transform_4(%arg0: i32, %arg1: i32) -> (i32, i32) {
    %c0_i32 = arith.constant 0 : i32
    %c0_i32_0 = arith.constant 0 : i32
    %c0_i32_1 = arith.constant 0 : i32
    return %c0_i32, %c0_i32_0 : i32, i32
  }
  func.func @transform_5(%arg0: i32, %arg1: i32) -> (i32, i32, i32) {
    %c0_i32 = arith.constant 0 : i32
    %c0_i32_0 = arith.constant 0 : i32
    return %arg0, %c0_i32, %arg1 : i32, i32, i32
  }
}

</mosaic_0001>

<bundles_post_ra>
// kernel: tpu_custom_call.1
= control target key start
LH: loop header
LB: loop body
LE: loop exit
PB: predicated region body
PF: predicated region fallthrough
CT: control target
= control target key end

     0   :  { %s880_s18 = smov 0   ;;  %s882_s19 = smov 0   ;;  %s981_s0 = inlined_call_operand.vmem [shape: bf16[2,8,7,8], index: 0, kind: input, shape index: {}]   ;;  %s982_s1 = inlined_call_operand.vmem [shape: bf16[16,7], index: 1, kind: input, shape index: {}]   ;;  %s983_s2 = inlined_call_operand.vmem [shape: f32[16,1], index: 2, kind: input, shape index: {}]   ;;  %s984_s3 = inlined_call_operand.vmem [shape: bf16[32,16], index: 3, kind: input, shape index: {}]   ;;  %s985_s4 = inlined_call_operand.vmem [shape: f32[32,1], index: 4, kind: input, shape index: {}]   ;;  %s986_s5 = inlined_call_operand.vmem [shape: f32[2,32,8], index: 5, kind: output, shape index: {}]  }
   0x1   :  { %s884_s20 = smov 0  }
   0x2 LB: > { %s27_s21 = sadd.s32 1, %s826_s19  ;;  %p722_p0 = scmp.ge.s32.totalorder %s830_s20, 1  ;;  %s830_s20 = sphi %s884_s20, %s15_s20   ;;  %s826_s19 = sphi %s882_s19, %s988_s19   ;;  %s822_s18 = sphi %s880_s18, %s987_s18  }
   0x3   : > { %p29_p1 = scmp.ge.s32.totalorder %s27_s21, 2  ;;  %p206_p2 = scmp.lt.s32.totalorder %s830_s20, 3 }
   0x5   : > { %s990_s21 = smov (%p29_p1, %s27_s21), 0  ;;  %p207_p3 = pnand %p722_p0, %p206_p2 }
   0x6   : > { %p240_p4 = scmp.lt.s32.totalorder (!%p207_p3), %s822_s18, 1  ;;  %s832_s26 = smov (!%p207_p3), 8  }
   0x7   : > { %210 = sbr.rel (%p207_p3) target bundleno = 777 (0x309), region = 40  ;;  %s833_s27 = smov (!%p207_p3), 24  }
   0x8   : > { %s834_s28 = smov (!%p207_p3), 16   ;;  %s835_s29 = smov (!%p207_p3), 32  }
   0x9   : > { %s836_s30 = smov (!%p207_p3), 40   ;;  %s837_s6 = smov (!%p207_p3), 48  }
   0xa   : > { %s838_s7 = smov (!%p207_p3), 56   ;;  %s845_s8 = smov (!%p207_p3), 104  }
   0xb   : > { %s846_s9 = smov (!%p207_p3), 96   ;;  %s847_s10 = smov (!%p207_p3), 88  }
   0xc   : > { %vm259_vm0 = vsmask.f32 3328  ;;  %s992_s18 = smov (!%p240_p4, %s822_s18), 1  ;;  %vm258_vm1 = vcmask 60416   ;;  %v261_v2 = vld [vmem:[#allocation2] sm:$0xf] }
   0xd   : > { %s742_s22 = sshll.u32 %s992_s18, 5  ;;  %vm260_vm2 = vmand %vm258_vm1, %vm259_vm0  ;;  %v839_v10 = vmov 0.0   ;;  %vm840_vm3 = vmmov 0   ;;  %v344_v11 = vld [vmem:[%s983_s2] sm:$0xff]  ;;  %v841_v12 = vmov 0   ;;  %v345_v13 = vld [vmem:[%s983_s2 + $0x8] sm:$0xff] }
   0xe   : > { %s247_s25 = scalar_lea.vmem %s981_s0, %s742_s22  ;;  %749 = vmatprep.subr.bf16.mxu0 %v839_v10  ;;  %751 = vmatprep.mubr.msk.bf16.mxu0 %vm840_vm3, %v839_v10  ;;  %v420_v14 = vld [vmem:[%s985_s4] sm:$0xff]  ;;  %v422_v15 = vld [vmem:[%s985_s4 + $0x10] sm:$0xff]  ;;  %v421_v16 = vld [vmem:[%s985_s4 + $0x8] sm:$0xff]  ;;  %vm270_vm4 = vcmask 126016   ;;  %vm281_vm6 = vcmask 191616   ;;  %vm292_vm8 = vcmask 257216   ;;  %s255_s15 = scalar_lea.vmem %s986_s5, %s742_s22 }
   0xf   : > { %v727_v0 = vld [vmem:[%s247_s25 + $0x4] sm:$0xf]  ;;  %v729_v1 = vld [vmem:[%s247_s25 + $0xc] sm:$0xf]  ;;  %v728_v3 = vld [vmem:[%s247_s25 + $0x8] sm:$0xf]  ;;  %803 = vset.pattern.permute.xlu1 %v841_v12  ;;  %804 = vset.pattern.permute.xlu0 %v841_v12 }
  0x10   : > { %267 = vrot.lane.b32.xlu0 %v727_v0, %s832_s26  ;;  %289 = vrot.lane.b32.xlu1 %v729_v1, %s833_s27  ;;  %v730_v4 = vld [vmem:[%s247_s25 + $0x10] sm:$0xf]  ;;  %v257_v5 = vld [vmem:[%s247_s25] sm:$0xf]  ;;  %vm271_vm5 = vmand %vm270_vm4, %vm259_vm0  ;;  %vm303_vm10 = vcmask 322816   ;;  %vm314_vm12 = vcmask 388416  }
  0x11   : > { %v262_v6 = vsel %vm260_vm2, %v257_v5, %v261_v2  ;;  %v731_v7 = vld [vmem:[%s247_s25 + $0x14] sm:$0xf]  ;;  %v732_v8 = vld [vmem:[%s247_s25 + $0x18] sm:$0xf]  ;;  %v733_v9 = vld [vmem:[%s247_s25 + $0x1c] sm:$0xf] }
  0x12   : > { %263 = vst [vmem:[#allocation2] sm:$0xf] %v262_v6  ;;  %v423_v17 = vld [vmem:[%s985_s4 + $0x18] sm:$0xff]  ;;  %vm282_vm7 = vmand %vm281_vm6, %vm259_vm0  ;;  %vm325_vm14 = vcmask 454016   ;;  %vm336_vm1 = vcmask 519616   ;;  %vm365_vm3 = vcmask 1042432  }
  0x13   : > { %vm293_vm9 = vmand %vm292_vm8, %vm259_vm0  ;;  %vm366_vm4 = vcmask 1043456   ;;  %v842_v39 = vmov 65535   ;;  %v805_v44 = vld [vmem:[%s982_s1] sm:$0xff]   ;;  %v807_v57 = vld [vmem:[%s984_s3 + $0x8] sm:$0xff]   ;;  %s848_s11 = smov 80   ;;  %s849_s12 = smov 72  }
  0x14   : > { %278 = vrot.lane.b32.xlu0 %v728_v3, %s834_s28  ;;  %300 = vrot.lane.b32.xlu1 %v730_v4, %s835_s29  ;;  %vm304_vm11 = vmand %vm303_vm10, %vm259_vm0  ;;  %v367_v40 = vsel %vm365_vm3, 4294967295, %v842_v39  ;;  %v806_v45 = vld [vmem:[%s984_s3] sm:$0xff]   ;;  %vm630_vm6 = vcmask 64512  }
  0x15   : > { %vm315_vm13 = vmand %vm314_vm12, %vm259_vm0  ;;  %v368_v41 = vsel %vm366_vm4, %v367_v40, 0 }
  0x16   : > { %vm326_vm15 = vmand %vm325_vm14, %vm259_vm0 }
  0x17   : > { %vm337_vm2 = vmand %vm336_vm1, %vm259_vm0  ;;  %vm454_vm0 = vcmask 130048  }
  0x18   : > { %311 = vrot.lane.b32.xlu0 %v731_v7, %s836_s30  ;;  %322 = vrot.lane.b32.xlu1 %v732_v8, %s837_s6  ;;  %s843_s6 = smov 120  }
  0x19   : > { %v272_v18 = vld [vmem:[#allocation2] sm:$0xf]  ;;  %757 = vmatprep.mubr.msk.bf16.mxu1 %vm454_vm0, %v806_v45 }
  0x1c   : > { %333 = vrot.lane.b32.xlu0 %v733_v9, %s838_s7  ;;  %348 = vperm.xlu1 %803, %v344_v11   ;;  %s844_s7 = smov 112  }
  0x20   : > { %353 = vperm.xlu0 %804, %v345_v13   ;;  %426 = vperm.xlu1 %803, %v420_v14  }
  0x24   : > { %436 = vperm.xlu0 %804, %v422_v15   ;;  %431 = vperm.xlu1 %803, %v421_v16  }
  0x28   : > { %441 = vperm.xlu1 %803, %v423_v17  }
  0x82   : > { %v268_v19 = vpop.permute.xlu0 %267  ;;  %v290_v24 = vpop.permute.xlu1 %289 }
  0x83   : > { %v273_v20 = vsel %vm271_vm5, %v268_v19, %v272_v18  ;;  %vm361_vm5 = vcmask 56320  }
  0x84   : > { %274 = vst [vmem:[#allocation2] sm:$0xf] %v273_v20 }
  0x86   : > { %v279_v21 = vpop.permute.xlu0 %278  ;;  %v301_v27 = vpop.permute.xlu1 %300 }
  0x8a   : > { %v312_v30 = vpop.permute.xlu0 %311  ;;  %v323_v33 = vpop.permute.xlu1 %322 }
  0x8b   : > { %v283_v22 = vld [vmem:[#allocation2] sm:$0xf] }
  0x8c   : > { %v284_v23 = vsel %vm282_vm7, %v279_v21, %v283_v22 }
  0x8d   : > { %285 = vst [vmem:[#allocation2] sm:$0xf] %v284_v23 }
  0x8e   : > { %v334_v36 = vpop.permute.xlu0 %333 }
  0x94   : > { %v294_v25 = vld [vmem:[#allocation2] sm:$0xf] }
  0x95   : > { %v295_v26 = vsel %vm293_vm9, %v290_v24, %v294_v25 }
  0x96   : > { %296 = vst [vmem:[#allocation2] sm:$0xf] %v295_v26 }
  0x97   : > { %v349_v47 = vpop.permute.xlu1 %348 }
  0x9b   : > { %v354_v50 = vpop.permute.xlu0 %353  ;;  %v427_v58 = vpop.permute.xlu1 %426 }
  0x9d   : > { %v305_v28 = vld [vmem:[#allocation2] sm:$0xf] }
  0x9e   : > { %v306_v29 = vsel %vm304_vm11, %v301_v27, %v305_v28 }
  0x9f   : > { %307 = vst [vmem:[#allocation2] sm:$0xf] %v306_v29  ;;  %v432_v59 = vpop.permute.xlu1 %431  ;;  %v437_v60 = vpop.permute.xlu0 %436 }
  0xa3   : > { %v442_v1 = vpop.permute.xlu1 %441 }
  0xa6   : > { %v316_v31 = vld [vmem:[#allocation2] sm:$0xf] }
  0xa7   : > { %v317_v32 = vsel %vm315_vm13, %v312_v30, %v316_v31 }
  0xa8   : > { %318 = vst [vmem:[#allocation2] sm:$0xf] %v317_v32 }
  0xaf   : > { %v327_v34 = vld [vmem:[#allocation2] sm:$0xf] }
  0xb0   : > { %v328_v35 = vsel %vm326_vm15, %v323_v33, %v327_v34 }
  0xb1   : > { %329 = vst [vmem:[#allocation2] sm:$0xf] %v328_v35 }
  0xb8   : > { %v338_v37 = vld [vmem:[#allocation2] sm:$0xf] }
  0xb9   : > { %v339_v38 = vsel %vm337_vm2, %v334_v36, %v338_v37 }
  0xba   : > { %340 = vst [vmem:[#allocation2] sm:$0xf] %v339_v38 }
  0xc1   : > { %v341_v42 = vld [vmem:[#allocation2] sm:$0xf] }
  0xc2   : > { %v370_v43 = vand.u32 %v368_v41, %v341_v42 }
  0xc4   : > { %750 = vmatpush3.bf16.msra.mxu0 %v370_v43 }
  0xc7   : > { %752 = vmatmul.mubr.msk.bf16.vlgmr.msra.gmra.mxu0 %vm361_vm5, %v805_v44 }
 0x187   : > { %v406_v46 = vpop.f32.mrf.mxu0 }
 0x188   : > { %v407_v49 = vadd.f32 %v406_v46, %v349_v47 }
 0x189   : > { %v753_v48 = vpop.f32.mrf.mxu0 }
 0x18a   : > { %v413_v54 = vmax.f32 %v407_v49, 0.0 }
 0x18b   : > { %v409_v51 = vpop.f32.mrf.mxu0 }
 0x18c   : > { %v410_v52 = vadd.f32 %v409_v51, %v354_v50 }
 0x18d   : > { %v754_v53 = vpop.f32.mrf.mxu0 }
 0x18e   : > { %v414_v55 = vmax.f32 %v410_v52, 0.0 }
 0x190   : > { %v415_v56 = vpack.c.bf16 %v414_v55, %v413_v54 }
 0x192   : > { %755 = vmatprep.subr.bf16.mxu1 %v415_v56 }
 0x193   : > { %756 = vmatpush3.bf16.msra.mxu1 %v415_v56 }
 0x196   : > { %758 = vmatmul.mubr.msk.bf16.vlgmr.msra.gmra.mxu1 %vm454_vm0, %v807_v57 }
 0x256   : > { %v759_v61 = vpop.f32.mrf.mxu1 }
 0x257   : > { %v504_v62 = vadd.f32 %v759_v61, %v437_v60 }
 0x258   : > { %v495_v63 = vpop.f32.mrf.mxu1 }
 0x259   : > { %v943_v0 = vmax.f32 %v504_v62, 0.0  ;;  %v496_v5 = vadd.f32 %v495_v63, %v427_v58 }
 0x25a   : > { %v760_v2 = vpop.f32.mrf.mxu1 }
 0x25b   : > { %v507_v3 = vadd.f32 %v760_v2, %v442_v1  ;;  %522 = vrot.lane.b32.xlu0 %v943_v0, %s843_s6  ;;  %v510_v7 = vmax.f32 %v496_v5, 0.0 }
 0x25c   : > { %v498_v6 = vpop.f32.mrf.mxu1 }
 0x25d   : > { %v946_v4 = vmax.f32 %v507_v3, 0.0  ;;  %v499_v8 = vadd.f32 %v498_v6, %v432_v59 }
 0x25f   : > { %538 = vrot.lane.b32.xlu0 %v943_v0, %s844_s7  ;;  %524 = vrot.lane.b32.xlu1 %v946_v4, %s843_s6  ;;  %v511_v9 = vmax.f32 %v499_v8, 0.0 }
 0x263   : > { %554 = vrot.lane.b32.xlu0 %v943_v0, %s845_s8  ;;  %540 = vrot.lane.b32.xlu1 %v946_v4, %s844_s7 }
 0x267   : > { %570 = vrot.lane.b32.xlu0 %v943_v0, %s846_s9  ;;  %556 = vrot.lane.b32.xlu1 %v946_v4, %s845_s8 }
 0x26b   : > { %586 = vrot.lane.b32.xlu0 %v943_v0, %s847_s10  ;;  %572 = vrot.lane.b32.xlu1 %v946_v4, %s846_s9 }
 0x26f   : > { %602 = vrot.lane.b32.xlu0 %v943_v0, %s848_s11  ;;  %588 = vrot.lane.b32.xlu1 %v946_v4, %s847_s10 }
 0x273   : > { %604 = vrot.lane.b32.xlu1 %v946_v4, %s848_s11  ;;  %518 = vrot.lane.b32.xlu0 %v510_v7, %s843_s6 }
 0x277   : > { %520 = vrot.lane.b32.xlu1 %v511_v9, %s843_s6  ;;  %534 = vrot.lane.b32.xlu0 %v510_v7, %s844_s7 }
 0x27b   : > { %536 = vrot.lane.b32.xlu1 %v511_v9, %s844_s7  ;;  %550 = vrot.lane.b32.xlu0 %v510_v7, %s845_s8 }
 0x27f   : > { %552 = vrot.lane.b32.xlu1 %v511_v9, %s845_s8  ;;  %566 = vrot.lane.b32.xlu0 %v510_v7, %s846_s9 }
 0x283   : > { %568 = vrot.lane.b32.xlu1 %v511_v9, %s846_s9  ;;  %582 = vrot.lane.b32.xlu0 %v510_v7, %s847_s10 }
 0x287   : > { %584 = vrot.lane.b32.xlu1 %v511_v9, %s847_s10  ;;  %598 = vrot.lane.b32.xlu0 %v510_v7, %s848_s11 }
 0x28b   : > { %600 = vrot.lane.b32.xlu1 %v511_v9, %s848_s11  ;;  %614 = vrot.lane.b32.xlu0 %v510_v7, %s849_s12 }
 0x28f   : > { %616 = vrot.lane.b32.xlu1 %v511_v9, %s849_s12  ;;  %618 = vrot.lane.b32.xlu0 %v943_v0, %s849_s12 }
 0x293   : > { %620 = vrot.lane.b32.xlu1 %v946_v4, %s849_s12 }
 0x2cd   : > { %v523_v10 = vpop.permute.xlu0 %522 }
 0x2ce   : > { %v532_v33 = vmax.f32 %v943_v0, %v523_v10 }
 0x2d1   : > { %v539_v11 = vpop.permute.xlu0 %538  ;;  %v525_v12 = vpop.permute.xlu1 %524 }
 0x2d2   : > { %v548_v36 = vmax.f32 %v532_v33, %v539_v11  ;;  %v533_v41 = vmax.f32 %v946_v4, %v525_v12 }
 0x2d5   : > { %v555_v13 = vpop.permute.xlu0 %554  ;;  %v541_v14 = vpop.permute.xlu1 %540 }
 0x2d6   : > { %v564_v42 = vmax.f32 %v548_v36, %v555_v13  ;;  %v549_v45 = vmax.f32 %v533_v41, %v541_v14 }
 0x2d9   : > { %v571_v15 = vpop.permute.xlu0 %570  ;;  %v557_v16 = vpop.permute.xlu1 %556 }
 0x2da   : > { %v580_v46 = vmax.f32 %v564_v42, %v571_v15  ;;  %v565_v51 = vmax.f32 %v549_v45, %v557_v16 }
 0x2dd   : > { %v587_v17 = vpop.permute.xlu0 %586  ;;  %v573_v18 = vpop.permute.xlu1 %572 }
 0x2de   : > { %v596_v52 = vmax.f32 %v580_v46, %v587_v17  ;;  %v581_v55 = vmax.f32 %v565_v51, %v573_v18 }
 0x2e1   : > { %v603_v19 = vpop.permute.xlu0 %602  ;;  %v589_v20 = vpop.permute.xlu1 %588 }
 0x2e2   : > { %v612_v56 = vmax.f32 %v596_v52, %v603_v19  ;;  %v597_v60 = vmax.f32 %v581_v55, %v589_v20 }
 0x2e5   : > { %v605_v21 = vpop.permute.xlu1 %604  ;;  %v519_v22 = vpop.permute.xlu0 %518 }
 0x2e6   : > { %v530_v29 = vmax.f32 %v510_v7, %v519_v22  ;;  %v613_v63 = vmax.f32 %v597_v60, %v605_v21 }
 0x2e9   : > { %v521_v23 = vpop.permute.xlu1 %520  ;;  %v535_v24 = vpop.permute.xlu0 %534 }
 0x2ea   : > { %v546_v30 = vmax.f32 %v530_v29, %v535_v24  ;;  %v531_v34 = vmax.f32 %v511_v9, %v521_v23 }
 0x2ed   : > { %v537_v25 = vpop.permute.xlu1 %536  ;;  %v551_v26 = vpop.permute.xlu0 %550 }
 0x2ee   : > { %v562_v35 = vmax.f32 %v546_v30, %v551_v26  ;;  %v547_v37 = vmax.f32 %v531_v34, %v537_v25 }
 0x2f1   : > { %v553_v27 = vpop.permute.xlu1 %552  ;;  %v567_v28 = vpop.permute.xlu0 %566 }
 0x2f2   : > { %v578_v38 = vmax.f32 %v562_v35, %v567_v28  ;;  %v563_v43 = vmax.f32 %v547_v37, %v553_v27 }
 0x2f5   : > { %v569_v31 = vpop.permute.xlu1 %568  ;;  %v583_v32 = vpop.permute.xlu0 %582 }
 0x2f6   : > { %v594_v44 = vmax.f32 %v578_v38, %v583_v32  ;;  %v579_v47 = vmax.f32 %v563_v43, %v569_v31 }
 0x2f9   : > { %v585_v39 = vpop.permute.xlu1 %584  ;;  %v599_v40 = vpop.permute.xlu0 %598 }
 0x2fa   : > { %v610_v48 = vmax.f32 %v594_v44, %v599_v40  ;;  %v595_v53 = vmax.f32 %v579_v47, %v585_v39 }
 0x2fd   : > { %v601_v49 = vpop.permute.xlu1 %600  ;;  %v615_v50 = vpop.permute.xlu0 %614 }
 0x2fe   : > { %v626_v54 = vmax.f32 %v610_v48, %v615_v50  ;;  %v611_v57 = vmax.f32 %v595_v53, %v601_v49 }
 0x300   : > { %631 = vst.msk [vmem:[%s255_s15] sm:$0xff] %vm630_vm6, %v626_v54 }
 0x301   : > { %v617_v58 = vpop.permute.xlu1 %616  ;;  %v619_v59 = vpop.permute.xlu0 %618 }
 0x302   : > { %v627_v61 = vmax.f32 %v611_v57, %v617_v58  ;;  %v628_v62 = vmax.f32 %v612_v56, %v619_v59 }
 0x304   : > { %632 = vst.msk [vmem:[%s255_s15 + $0x8] sm:$0xff] %vm630_vm6, %v627_v61  ;;  %633 = vst.msk [vmem:[%s255_s15 + $0x10] sm:$0xff] %vm630_vm6, %v628_v62 }
 0x305   : > { %v621_v0 = vpop.permute.xlu1 %620 }
 0x306   : > { %v629_v1 = vmax.f32 %v613_v63, %v621_v0 }
 0x308   : > { %634 = vst.msk [vmem:[%s255_s15 + $0x18] sm:$0xff] %vm630_vm6, %v629_v1 }
 0x309 PF: > { %s15_s20 = sadd.s32 1, %s830_s20   ;;  %s987_s18 = smov %s826_s19 }
 0x30a   : > { %p12_p5 = scmp.ge.s32.totalorder %s15_s20, 4   ;;  %s988_s19 = smov %s990_s21 }
 0x30c   :  { %14 = sbr.rel (!%p12_p5) target bundleno = 2 (0x2), region = 77 }

</bundles_post_ra>
